<compile_context>
chip_gen: v7x
topology: tpu7x:2x2x1
jax: 0.10.0
libtpu: 0.0.40
codegen_flags: <defaults>
</compile_context>

<pallas_src>
import jax
import jax.numpy as jnp
from jax.experimental import pallas as pl
from jax.experimental.pallas import tpu as pltpu


def _make_contrastive_loss_kernel(temperature: float):
    inv_temp = 1.0 / float(temperature)

    def kernel(img_ref, txt_ref, txt_diag_ref, out_ref, m_col, l_col, acc):
        i = pl.program_id(0)
        last = pl.num_programs(0) - 1
        b = txt_ref.shape[0]

        @pl.when(i == 0)
        def _init():
            m_col[...] = jnp.full(m_col.shape, -jnp.inf, dtype=jnp.float32)
            l_col[...] = jnp.zeros(l_col.shape, dtype=jnp.float32)
            acc[...] = jnp.zeros(acc.shape, dtype=jnp.float32)

        # Fold 1/temperature into the image operand (native dtype, stays MXU-friendly).
        img = img_ref[...]
        img = img * jnp.asarray(inv_temp, dtype=img.dtype)

        # logits[r, j] = <img_tile_r, text_j> / temperature  -> (TM, B) f32 accumulation.
        # Contraction on the last dim of both operands: no explicit transpose.
        logits = jax.lax.dot_general(
            img, txt_ref[...],
            dimension_numbers=(((1,), (1,)), ((), ())),
            preferred_element_type=jnp.float32,
        )

        # Diagonal (target) logits for this row tile via an elementwise row dot.
        # txt_diag_ref holds the text rows aligned with this image row tile.
        diag = jnp.sum(
            img.astype(jnp.float32) * txt_diag_ref[...].astype(jnp.float32),
            axis=-1, keepdims=True)                                  # (TM, 1)

        # --- image->text direction: full rows present in the slab -> exact LSE.
        row_max = jnp.max(logits, axis=1, keepdims=True)             # (TM, 1)
        row_lse = jnp.log(jnp.sum(jnp.exp(logits - row_max),
                                  axis=1, keepdims=True)) + row_max  # (TM, 1)

        # loss = (sum_row_lse + sum_col_lse - 2 * sum_diag) / (2B); accumulate
        # the row/diagonal part per tile.
        acc[...] += jnp.sum(row_lse) - 2.0 * jnp.sum(diag)

        # --- text->image direction: online logsumexp over row tiles.
        tile_col_max = jnp.max(logits, axis=0, keepdims=True)        # (1, B)
        m_new = jnp.maximum(m_col[...], tile_col_max)
        # NOTE: second exp kept on purpose (numerical safety, see header comment).
        l_col[...] = (l_col[...] * jnp.exp(m_col[...] - m_new)
                      + jnp.sum(jnp.exp(logits - m_new), axis=0, keepdims=True))
        m_col[...] = m_new

        @pl.when(i == last)
        def _finalize():
            col_lse_sum = jnp.sum(jnp.log(l_col[...]) + m_col[...])
            out_ref[...] = (acc[...] + col_lse_sum) * (0.5 / b)

    return kernel


def contrastive_loss(image_features, text_features, temperature: float = 0.07,
                     block_rows=None):
    """Pallas equivalent of ContrastiveLoss.forward; returns a scalar f32."""
    assert image_features.shape == text_features.shape
    b, d = image_features.shape

    if block_rows is None:
        # MXU-friendly row tile: 256 suits v6e/v7x (2x256^2 MXU); use 128 on v5e
        # (4x128^2 MXU, smaller scoped-VMEM default).
        block_rows = min(b, 256)
    assert b % block_rows == 0, "batch must be divisible by the row tile size"
    grid = (b // block_rows,)

    itemsize = jnp.dtype(image_features.dtype).itemsize
    cost = pl.CostEstimate(
        flops=2 * b * b * d + 8 * b * b,          # matmul + softmax VALU work
        transcendentals=2 * b * b,                # row- and column-shifted exps
        bytes_accessed=2 * b * d * itemsize + 4,  # both feature matrices + scalar out
    )

    out = pl.pallas_call(
        _make_contrastive_loss_kernel(temperature),
        out_shape=jax.ShapeDtypeStruct((1, 1), jnp.float32),
        grid_spec=pltpu.PrefetchScalarGridSpec(
            num_scalar_prefetch=0,
            grid=grid,
            in_specs=[
                pl.BlockSpec((block_rows, d), lambda i: (i, 0)),  # image row tile
                pl.BlockSpec((b, d), lambda i: (0, 0)),           # full text (resident)
                pl.BlockSpec((block_rows, d), lambda i: (i, 0)),  # text rows for diagonal
            ],
            out_specs=pl.BlockSpec((1, 1), lambda i: (0, 0)),
            scratch_shapes=[
                pltpu.VMEM((1, b), jnp.float32),   # running column max
                pltpu.VMEM((1, b), jnp.float32),   # running column sum (shifted)
                pltpu.VMEM((1, 1), jnp.float32),   # scalar accumulator (row lse - 2*diag)
            ],
        ),
        compiler_params=pltpu.CompilerParams(
            # The row-tile axis carries the online column stats -> sequential.
            dimension_semantics=("arbitrary",),
        ),
        cost_estimate=cost,
    )(image_features, text_features, text_features)
    return out[0, 0]


def _reference_loss(image_features, text_features, temperature: float = 0.07):
    logits = (image_features.astype(jnp.float32)
              @ text_features.astype(jnp.float32).T) / temperature
    n = logits.shape[0]
    idx = jnp.arange(n)

    def ce(lg):
        lse = jax.scipy.special.logsumexp(lg, axis=1)
        return jnp.mean(lse - lg[idx, idx])

    return (ce(logits) + ce(logits.T)) / 2.0


if __name__ == "__main__":
    key = jax.random.PRNGKey(0)
    k_img, k_txt = jax.random.split(key)

    # Small shapes consistent with the module: batch of paired image/text embeddings.
    B, D = 8, 32
    image_features = jax.random.normal(k_img, (B, D), dtype=jnp.float32)
    text_features = jax.random.normal(k_txt, (B, D), dtype=jnp.float32)

    loss = contrastive_loss(image_features, text_features, temperature=0.07)
    loss = jax.block_until_ready(loss)
    ref = _reference_loss(image_features, text_features, temperature=0.07)
    assert jnp.allclose(loss, ref, rtol=1e-4, atol=1e-4), (loss, ref)

    # Second check exercising the multi-tile (grid > 1) online-logsumexp path.
    k_img2, k_txt2 = jax.random.split(jax.random.PRNGKey(0), 2)
    B2, D2 = 256, 128
    img2 = jax.random.normal(k_img2, (B2, D2), dtype=jnp.float32)
    txt2 = jax.random.normal(k_txt2, (B2, D2), dtype=jnp.float32)
    loss2 = contrastive_loss(img2, txt2, temperature=0.07, block_rows=128)
    loss2 = jax.block_until_ready(loss2)
    ref2 = _reference_loss(img2, txt2, temperature=0.07)
    assert jnp.allclose(loss2, ref2, rtol=1e-4, atol=1e-3), (loss2, ref2)

    print("KERNEL_OK")
</pallas_src>

<mosaic_0001>
module attributes {stable_mosaic.version = 11 : i64} {
  func.func @kernel(%arg0: i32, %arg1: memref<8x32xf32, #tpu.memory_space<vmem>>, %arg2: memref<8x32xf32, #tpu.memory_space<vmem>>, %arg3: memref<8x32xf32, #tpu.memory_space<vmem>>, %arg4: memref<1x1xf32, #tpu.memory_space<vmem>>, %arg5: memref<1x8xf32, #tpu.memory_space<vmem>>, %arg6: memref<1x8xf32, #tpu.memory_space<vmem>>, %arg7: memref<1x1xf32, #tpu.memory_space<vmem>>) attributes {dimension_semantics = [#tpu.dimension_semantics<arbitrary>], iteration_bounds = array<i64: 1>, scalar_prefetch = 0 : i64, scratch_operands = 3 : i64, tpu.core_type = #tpu.core_type<tc>, window_params = [{transform_indices = @transform_0, window_bounds = array<i64: 8, 32>}, {pipeline_mode = #tpu.pipeline_mode<synchronous>, transform_indices = @transform_1, window_bounds = array<i64: 8, 32>}, {transform_indices = @transform_2, window_bounds = array<i64: 8, 32>}, {pipeline_mode = #tpu.pipeline_mode<synchronous>, transform_indices = @transform_3, window_bounds = array<i64: 1, 1>}]} {
    %c0_i32 = arith.constant 0 : i32
    %0 = arith.cmpi eq, %arg0, %c0_i32 : i32
    %1 = arith.extui %0 : i1 to i32
    %c0_i32_0 = arith.constant 0 : i32
    %2 = arith.cmpi ne, %1, %c0_i32_0 : i32
    scf.if %2 {
      %cst_31 = arith.constant 0xFF800000 : f32
      %55 = vector.broadcast %cst_31 : f32 to vector<1x8xf32>
      %c0_32 = arith.constant 0 : index
      %c0_33 = arith.constant 0 : index
      %56 = vector.load %arg5[%c0_32, %c0_33] : memref<1x8xf32, #tpu.memory_space<vmem>>, vector<1x8xf32>
      tpu.vector_store %arg5[%c0_32, %c0_33], %55 {strides = array<i32>} : memref<1x8xf32, #tpu.memory_space<vmem>>, vector<1x8xf32>,
      %cst_34 = arith.constant 0.000000e+00 : f32
      %57 = vector.broadcast %cst_34 : f32 to vector<1x8xf32>
      %c0_35 = arith.constant 0 : index
      %c0_36 = arith.constant 0 : index
      %58 = vector.load %arg6[%c0_35, %c0_36] : memref<1x8xf32, #tpu.memory_space<vmem>>, vector<1x8xf32>
      tpu.vector_store %arg6[%c0_35, %c0_36], %57 {strides = array<i32>} : memref<1x8xf32, #tpu.memory_space<vmem>>, vector<1x8xf32>,
      %cst_37 = arith.constant 0.000000e+00 : f32
      %59 = vector.broadcast %cst_37 : f32 to vector<1x1xf32>
      %c0_38 = arith.constant 0 : index
      %c0_39 = arith.constant 0 : index
      %60 = vector.load %arg7[%c0_38, %c0_39] : memref<1x1xf32, #tpu.memory_space<vmem>>, vector<1x1xf32>
      tpu.vector_store %arg7[%c0_38, %c0_39], %59 {strides = array<i32>} : memref<1x1xf32, #tpu.memory_space<vmem>>, vector<1x1xf32>,
    } else {
    }
    %c0 = arith.constant 0 : index
    %c0_1 = arith.constant 0 : index
    %3 = vector.load %arg1[%c0, %c0_1] : memref<8x32xf32, #tpu.memory_space<vmem>>, vector<8x32xf32>
    %cst = arith.constant 14.2857141 : f32
    %4 = vector.broadcast %cst : f32 to vector<8x32xf32>
    %5 = arith.mulf %3, %4 : vector<8x32xf32>
    %c0_2 = arith.constant 0 : index
    %c0_3 = arith.constant 0 : index
    %6 = vector.load %arg2[%c0_2, %c0_3] : memref<8x32xf32, #tpu.memory_space<vmem>>, vector<8x32xf32>
    %cst_4 = arith.constant dense<0.000000e+00> : vector<8x8xf32>
    %7 = tpu.matmul %5, %6, %cst_4 {dimension_numbers = #tpu.dot_dimension_numbers<[1], [1], [0], [0], [0, 0, 1, 0], [], []>} : vector<8x32xf32>, vector<8x32xf32>, vector<8x8xf32> -> vector<8x8xf32>
    %c0_5 = arith.constant 0 : index
    %c0_6 = arith.constant 0 : index
    %8 = vector.load %arg3[%c0_5, %c0_6] : memref<8x32xf32, #tpu.memory_space<vmem>>, vector<8x32xf32>
    %9 = arith.mulf %5, %8 : vector<8x32xf32>
    %cst_7 = arith.constant dense<0.000000e+00> : vector<8xf32>
    %10 = vector.multi_reduction <add>, %9, %cst_7 [1] : vector<8x32xf32> to vector<8xf32>
    %11 = vector.shape_cast %10 : vector<8xf32> to vector<8x1xf32>
    %cst_8 = arith.constant dense<0xFF800000> : vector<8xf32>
    %12 = vector.multi_reduction <maximumf>, %7, %cst_8 [1] : vector<8x8xf32> to vector<8xf32>
    %13 = vector.shape_cast %12 : vector<8xf32> to vector<8x1xf32>
    %14 = vector.broadcast %13 : vector<8x1xf32> to vector<8x8xf32>
    %15 = arith.subf %7, %14 : vector<8x8xf32>
    %16 = math.exp %15 : vector<8x8xf32>
    %cst_9 = arith.constant dense<0.000000e+00> : vector<8xf32>
    %17 = vector.multi_reduction <add>, %16, %cst_9 [1] : vector<8x8xf32> to vector<8xf32>
    %18 = vector.shape_cast %17 : vector<8xf32> to vector<8x1xf32>
    %19 = math.log %18 : vector<8x1xf32>
    %20 = arith.addf %19, %13 : vector<8x1xf32>
    %c0_10 = arith.constant 0 : index
    %c0_11 = arith.constant 0 : index
    %21 = vector.load %arg7[%c0_10, %c0_11] : memref<1x1xf32, #tpu.memory_space<vmem>>, vector<1x1xf32>
    %22 = vector.shape_cast %20 : vector<8x1xf32> to vector<1x8x1xf32>
    %cst_12 = arith.constant dense<0.000000e+00> : vector<1xf32>
    %23 = vector.multi_reduction <add>, %22, %cst_12 [1, 2] : vector<1x8x1xf32> to vector<1xf32>
    %24 = vector.shape_cast %23 : vector<1xf32> to vector<1x1x1xf32>
    %25 = vector.extract %24[0, 0, 0] : f32 from vector<1x1x1xf32>
    %26 = vector.shape_cast %11 : vector<8x1xf32> to vector<1x8x1xf32>
    %cst_13 = arith.constant dense<0.000000e+00> : vector<1xf32>
    %27 = vector.multi_reduction <add>, %26, %cst_13 [1, 2] : vector<1x8x1xf32> to vector<1xf32>
    %28 = vector.shape_cast %27 : vector<1xf32> to vector<1x1x1xf32>
    %29 = vector.extract %28[0, 0, 0] : f32 from vector<1x1x1xf32>
    %cst_14 = arith.constant 2.000000e+00 : f32
    %30 = arith.mulf %cst_14, %29 : f32
    %31 = arith.subf %25, %30 : f32
    %32 = vector.broadcast %31 : f32 to vector<1x1xf32>
    %33 = arith.addf %21, %32 : vector<1x1xf32>
    %c0_15 = arith.constant 0 : index
    %c0_16 = arith.constant 0 : index
    %34 = vector.load %arg7[%c0_15, %c0_16] : memref<1x1xf32, #tpu.memory_space<vmem>>, vector<1x1xf32>
    tpu.vector_store %arg7[%c0_15, %c0_16], %33 {strides = array<i32>} : memref<1x1xf32, #tpu.memory_space<vmem>>, vector<1x1xf32>,
    %cst_17 = arith.constant dense<0xFF800000> : vector<8xf32>
    %35 = vector.multi_reduction <maximumf>, %7, %cst_17 [0] : vector<8x8xf32> to vector<8xf32>
    %36 = vector.shape_cast %35 : vector<8xf32> to vector<1x8xf32>
    %c0_18 = arith.constant 0 : index
    %c0_19 = arith.constant 0 : index
    %37 = vector.load %arg5[%c0_18, %c0_19] : memref<1x8xf32, #tpu.memory_space<vmem>>, vector<1x8xf32>
    %38 = arith.maximumf %37, %36 : vector<1x8xf32>
    %c0_20 = arith.constant 0 : index
    %c0_21 = arith.constant 0 : index
    %39 = vector.load %arg6[%c0_20, %c0_21] : memref<1x8xf32, #tpu.memory_space<vmem>>, vector<1x8xf32>
    %c0_22 = arith.constant 0 : index
    %c0_23 = arith.constant 0 : index
    %40 = vector.load %arg5[%c0_22, %c0_23] : memref<1x8xf32, #tpu.memory_space<vmem>>, vector<1x8xf32>
    %41 = arith.subf %40, %38 : vector<1x8xf32>
    %42 = math.exp %41 : vector<1x8xf32>
    %43 = arith.mulf %39, %42 : vector<1x8xf32>
    %44 = vector.broadcast %38 : vector<1x8xf32> to vector<8x8xf32>
    %45 = arith.subf %7, %44 : vector<8x8xf32>
    %46 = math.exp %45 : vector<8x8xf32>
    %cst_24 = arith.constant dense<0.000000e+00> : vector<8xf32>
    %47 = vector.multi_reduction <add>, %46, %cst_24 [0] : vector<8x8xf32> to vector<8xf32>
    %48 = vector.shape_cast %47 : vector<8xf32> to vector<1x8xf32>
    %49 = arith.addf %43, %48 : vector<1x8xf32>
    %c0_25 = arith.constant 0 : index
    %c0_26 = arith.constant 0 : index
    %50 = vector.load %arg6[%c0_25, %c0_26] : memref<1x8xf32, #tpu.memory_space<vmem>>, vector<1x8xf32>
    tpu.vector_store %arg6[%c0_25, %c0_26], %49 {strides = array<i32>} : memref<1x8xf32, #tpu.memory_space<vmem>>, vector<1x8xf32>,
    %c0_27 = arith.constant 0 : index
    %c0_28 = arith.constant 0 : index
    %51 = vector.load %arg5[%c0_27, %c0_28] : memref<1x8xf32, #tpu.memory_space<vmem>>, vector<1x8xf32>
    tpu.vector_store %arg5[%c0_27, %c0_28], %38 {strides = array<i32>} : memref<1x8xf32, #tpu.memory_space<vmem>>, vector<1x8xf32>,
    %c0_i32_29 = arith.constant 0 : i32
    %52 = arith.cmpi eq, %arg0, %c0_i32_29 : i32
    %53 = arith.extui %52 : i1 to i32
    %c0_i32_30 = arith.constant 0 : i32
    %54 = arith.cmpi ne, %53, %c0_i32_30 : i32
    scf.if %54 {
      %c0_31 = arith.constant 0 : index
      %c0_32 = arith.constant 0 : index
      %55 = vector.load %arg6[%c0_31, %c0_32] : memref<1x8xf32, #tpu.memory_space<vmem>>, vector<1x8xf32>
      %56 = math.log %55 : vector<1x8xf32>
      %c0_33 = arith.constant 0 : index
      %c0_34 = arith.constant 0 : index
      %57 = vector.load %arg5[%c0_33, %c0_34] : memref<1x8xf32, #tpu.memory_space<vmem>>, vector<1x8xf32>
      %58 = arith.addf %56, %57 : vector<1x8xf32>
      %59 = vector.shape_cast %58 : vector<1x8xf32> to vector<1x1x8xf32>
      %cst_35 = arith.constant dense<0.000000e+00> : vector<1xf32>
      %60 = vector.multi_reduction <add>, %59, %cst_35 [1, 2] : vector<1x1x8xf32> to vector<1xf32>
      %61 = vector.shape_cast %60 : vector<1xf32> to vector<1x1x1xf32>
      %62 = vector.extract %61[0, 0, 0] : f32 from vector<1x1x1xf32>
      %c0_36 = arith.constant 0 : index
      %c0_37 = arith.constant 0 : index
      %63 = vector.load %arg7[%c0_36, %c0_37] : memref<1x1xf32, #tpu.memory_space<vmem>>, vector<1x1xf32>
      %64 = vector.broadcast %62 : f32 to vector<1x1xf32>
      %65 = arith.addf %63, %64 : vector<1x1xf32>
      %cst_38 = arith.constant 6.250000e-02 : f32
      %66 = vector.broadcast %cst_38 : f32 to vector<1x1xf32>
      %67 = arith.mulf %65, %66 : vector<1x1xf32>
      %c0_39 = arith.constant 0 : index
      %c0_40 = arith.constant 0 : index
      %68 = vector.load %arg4[%c0_39, %c0_40] : memref<1x1xf32, #tpu.memory_space<vmem>>, vector<1x1xf32>
      tpu.vector_store %arg4[%c0_39, %c0_40], %67 {strides = array<i32>} : memref<1x1xf32, #tpu.memory_space<vmem>>, vector<1x1xf32>,
    } else {
    }
    return
  }
  func.func @transform_0(%arg0: i32) -> (i32, i32) {
    %c0_i32 = arith.constant 0 : i32
    %c0_i32_0 = arith.constant 0 : i32
    return %arg0, %c0_i32 : i32, i32
  }
  func.func @transform_1(%arg0: i32) -> (i32, i32) {
    %c0_i32 = arith.constant 0 : i32
    %c0_i32_0 = arith.constant 0 : i32
    %c0_i32_1 = arith.constant 0 : i32
    return %c0_i32, %c0_i32_0 : i32, i32
  }
  func.func @transform_2(%arg0: i32) -> (i32, i32) {
    %c0_i32 = arith.constant 0 : i32
    %c0_i32_0 = arith.constant 0 : i32
    return %arg0, %c0_i32 : i32, i32
  }
  func.func @transform_3(%arg0: i32) -> (i32, i32) {
    %c0_i32 = arith.constant 0 : i32
    %c0_i32_0 = arith.constant 0 : i32
    %c0_i32_1 = arith.constant 0 : i32
    return %c0_i32, %c0_i32_0 : i32, i32
  }
}

</mosaic_0001>

<bundles_post_ra>
// kernel: tpu_custom_call.1
= control target key start
LH: loop header
LB: loop body
LE: loop exit
PB: predicated region body
PF: predicated region fallthrough
CT: control target
= control target key end

     0   :  { %8 = vsyncpa [#allocation6], 0  ;;  %s476_s0 = inlined_call_operand.hbm [shape: f32[8,32], index: 0, kind: input, shape index: {}]   ;;  %s477_s1 = inlined_call_operand.hbm [shape: f32[8,32], index: 1, kind: input, shape index: {}]   ;;  %s478_s2 = inlined_call_operand.hbm [shape: f32[8,32], index: 2, kind: input, shape index: {}]   ;;  %s479_s3 = inlined_call_operand.hbm [shape: f32[1,1], index: 3, kind: output, shape index: {}]  }
   0x1   :  { %9 = vsyncpa [#allocation9], 0 }
   0x2   :  { %10 = vsyncpa [#allocation7], 0  ;;  %s383_s12 = smov [#allocation8]   ;;  %s384_s14 = smov [#allocation5]  }
   0x3   :  { %s27_s13 = sshll.u32 %s383_s12, 4  ;;  %s17_s15 = sshll.u32 %s384_s14, 4  ;;  %s28_s13 = int_to_ptr.vmem [resolvable:$true] %s27_s13  ;;  %s18_s15 = int_to_ptr.vmem [resolvable:$true] %s17_s15 }
   0x4   :  { %s289_s18 = scalar_lea.hbm %s477_s1, 128 }
   0x5   :  { %p290_p0 = scmp.ne.s32.totalorder %s477_s1, %s289_s18  ;;  %p293_p1 = scmp.lt.u32.totalorder %s289_s18, %s477_s1 }
   0x7   :  { %p295_p2 = pnand %p293_p1, %p290_p0 }
   0x9   :  { %298 = shalt.err (!%p295_p2)
}
   0xa   :  { %s299_s23 = scalar_lea.vmem %s28_s13, 128  ;;  %p304_p4 = scmp.lt.s32.totalorder %s28_s13, %s28_s13 }
   0xb   :  { %p300_p3 = scmp.ne.s32.totalorder %s28_s13, %s299_s23  ;;  %p305_p5 = scmp.lt.s32.totalorder %s299_s23, %s299_s23 }
   0xd   :  { %p306_p6 = por %p305_p5, %p304_p4 }
   0xf   :  { %p307_p7 = pnand %p306_p6, %p300_p3 }
  0x11   :  { %310 = shalt.err (!%p307_p7)
}
  0x12   :  { %30 = dma.hbm_to_vmem [thread:$0]  %s477_s1, 128, %s28_s13, [#allocation9]  }
  0x13   :  { %s311_s28 = scalar_lea.hbm %s476_s0, 128 }
  0x14   :  { %p312_p8 = scmp.ne.s32.totalorder %s476_s0, %s311_s28  ;;  %p315_p9 = scmp.lt.u32.totalorder %s311_s28, %s476_s0 }
  0x16   :  { %p317_p10 = pnand %p315_p9, %p312_p8 }
  0x18   :  { %320 = shalt.err (!%p317_p10)
}
  0x19   :  { %s321_s6 = scalar_lea.vmem %s18_s15, 128  ;;  %p326_p12 = scmp.lt.s32.totalorder %s18_s15, %s18_s15 }
  0x1a   :  { %p322_p11 = scmp.ne.s32.totalorder %s18_s15, %s321_s6  ;;  %p327_p13 = scmp.lt.s32.totalorder %s321_s6, %s321_s6 }
  0x1c   :  { %p328_p0 = por %p327_p13, %p326_p12 }
  0x1e   :  { %p329_p1 = pnand %p328_p0, %p322_p11 }
  0x20   :  { %332 = shalt.err (!%p329_p1)
}
  0x21   :  { %20 = dma.hbm_to_vmem [thread:$0]  %s476_s0, 128, %s18_s15, [#allocation6]  }
  0x22   :  { %s385_s8 = smov [#allocation10]   ;;  %s333_s12 = scalar_lea.hbm %s478_s2, 128 }
  0x23   :  { %s37_s9 = sshll.u32 %s385_s8, 4  ;;  %p334_p2 = scmp.ne.s32.totalorder %s478_s2, %s333_s12  ;;  %s38_s9 = int_to_ptr.vmem [resolvable:$true] %s37_s9 }
  0x24   :  { %p337_p3 = scmp.lt.u32.totalorder %s333_s12, %s478_s2 }
  0x26   :  { %p339_p4 = pnand %p337_p3, %p334_p2 }
  0x28   :  { %342 = shalt.err (!%p339_p4)
}
  0x29   :  { %s343_s18 = scalar_lea.vmem %s38_s9, 128  ;;  %p348_p6 = scmp.lt.s32.totalorder %s38_s9, %s38_s9 }
  0x2a   :  { %p344_p5 = scmp.ne.s32.totalorder %s38_s9, %s343_s18  ;;  %p349_p7 = scmp.lt.s32.totalorder %s343_s18, %s343_s18 }
  0x2c   :  { %p350_p8 = por %p349_p7, %p348_p6 }
  0x2e   :  { %p351_p9 = pnand %p350_p8, %p344_p5 }
  0x30   :  { %354 = shalt.err (!%p351_p9)
}
  0x31   :  { %40 = dma.hbm_to_vmem [thread:$0]  %s478_s2, 128, %s38_s9, [#allocation9]  }
  0x32   :  { %377 = dma.done.wait [#allocation6], 128  }
  0x33   :  { %378 = vsyncadd [#allocation6], 4294967168 }
  0x34   :  { %379 = dma.done.wait [#allocation9], 256  }
  0x35   :  { %380 = vsyncadd [#allocation9], 4294967040  ;;  %v386_v0 = vmov 0.0   ;;  %vm387_vm0 = vmmov 0   ;;  %vm62_vm1 = vcmask 261120   ;;  %v61_v1 = vld [vmem:[#allocation8] sm:$0xff]  ;;  %v199_v9 = vlaneseq }
  0x36   :  { %261 = vmatprep.subr.mxu0 %v386_v0  ;;  %263 = vmatprep.mubr.msk.f32.mxu0 %vm387_vm0, %v386_v0  ;;  %v59_v2 = vld [vmem:[#allocation5] sm:$0xff]  ;;  %vm54_vm2 = vcmask 57344   ;;  %v388_v4 = vmov -inf   ;;  %vm144_vm3 = vcmask 64512   ;;  %v139_v25 = vld [vmem:[#allocation10] sm:$0xff]  ;;  %vm158_vm4 = vcmask 7168  }
  0x37   :  { %262 = vmatpush3.xpose.msk.msra.mxu0 %vm62_vm1, %v61_v1  ;;  %v60_v3 = vmul.f32 14.285714, %v59_v2  ;;  %55 = vst.msk [vmem:[#allocation2] sm:$0x1] %vm54_vm2, %v388_v4  ;;  %56 = vst.msk [vmem:[#allocation3] sm:$0x1] %vm54_vm2, %v386_v0 }
  0x38   :  { %v200_v12 = vshrl.u32 %v199_v9, 7  ;;  %vm57_vm5 = vcmask 0   ;;  %s389_s23 = smov [#allocation11]  }
  0x39   :  { %v140_v27 = vmul.f32 %v139_v25, %v60_v3  ;;  %58 = vst.msk [vmem:[#allocation4] sm:$0x1] %vm57_vm5, %v386_v0  ;;  %s247_s24 = sshll.u32 %s389_s23, 4  ;;  %s248_s24 = int_to_ptr.vmem [resolvable:$true] %s247_s24 }
  0x3a   :  { %264 = vmatmul.mubr.msk.f32.vlgmr.msra.gmra.mrb[0].mxu0 %vm62_vm1, %v60_v3  ;;  %v201_v16 = vsub.s32 0, %v200_v12  ;;  %s355_s25 = scalar_lea.vmem %s248_s24, 16  ;;  %s359_s26 = scalar_lea.vmem %s248_s24, 32 }
  0x3b   :  { %v141_v29 = vsel %vm62_vm1, %v140_v27, 0.0  ;;  %p356_p10 = scmp.ne.s32.totalorder %s248_s24, %s355_s25  ;;  %p360_p11 = scmp.lt.s32.totalorder %s248_s24, %s248_s24 }
  0x3c   :  { %142 = vadd.xlane.f32.xlu1 %v141_v29  ;;  %p361_p12 = scmp.lt.s32.totalorder %s359_s26, %s355_s25 }
  0x3e   :  { %v191_v15 = vld [vmem:[#allocation2] sm:$0x1]  ;;  %v193_v34 = vld [vmem:[#allocation3] sm:$0x1]  ;;  %p362_p13 = por %p361_p12, %p360_p11 }
  0x40   :  { %p363_p0 = pnand %p362_p13, %p356_p10 }
  0xc9   :  { %v143_v44 = vpop.xlane.xlu1 %142 }
  0xca   :  { %v169_v45 = vsel %vm158_vm4, %v143_v44, 0.0 }
 0x10d   :  { %v135_v5 = vpop.f32.mrb[0].mxu0 }
 0x10e   :  { %v265_v6 = vpop.f32.mrb[1].mxu0  ;;  %v145_v7 = vsel %vm144_vm3, %v135_v5, -inf }
 0x10f   :  { %146 = vmax.xlane.f32.xlu0 %v145_v7  ;;  %v185_v8 = vrot.slane %v145_v7, 4 }
 0x111   :  { %v186_v10 = vmax.f32 %v145_v7, %v185_v8 }
 0x113   :  { %v187_v11 = vrot.slane %v186_v10, 2 }
 0x115   :  { %v188_v13 = vmax.f32 %v186_v10, %v187_v11 }
 0x117   :  { %v189_v14 = vrot.slane %v188_v13, 1 }
 0x119   :  { %v190_v17 = vmax.f32 %v188_v13, %v189_v14  ;;  %v157_v14 = vld [vmem:[#allocation4] sm:$0x1] }
 0x11b   :  { %v192_v18 = vmax.f32 %v191_v15, %v190_v17 }
 0x11d   :  { %v202_v19 = vrot.slane %v192_v18, %v201_v16  ;;  %217 = vst.msk [vmem:[#allocation2] sm:$0x1] %vm54_vm2, %v192_v18  ;;  %v194_v22 = vsub.f32 %v191_v15, %v192_v18 }
 0x11f   :  { %v204_v20 = vsub.f32 %v135_v5, %v202_v19  ;;  %v195_v23 = vmul.f32 1.442695, %v194_v22 }
 0x121   :  { %v205_v21 = vmul.f32 1.442695, %v204_v20 }
 0x123   :  { %279 = vpow2.f32 %v205_v21 }
 0x124   :  { %281 = vpow2.f32 %v195_v23  ;;  %v224_v53 = vld [vmem:[#allocation2] sm:$0x1] }
 0x12d   :  { %v280_v24 = vpop.eup %279 }
 0x12e   :  { %v207_v26 = vsel %vm144_vm3, %v280_v24, 0.0  ;;  %v282_v33 = vpop.eup %281 }
 0x12f   :  { %v208_v28 = vrot.slane %v207_v26, 4  ;;  %v197_v37 = vmul.f32 %v282_v33, %v193_v34 }
 0x131   :  { %v209_v30 = vadd.f32 %v208_v28, %v207_v26 }
 0x133   :  { %v210_v31 = vrot.slane %v209_v30, 2 }
 0x135   :  { %v211_v32 = vadd.f32 %v210_v31, %v209_v30 }
 0x137   :  { %v212_v35 = vrot.slane %v211_v32, 1 }
 0x139   :  { %v213_v36 = vadd.f32 %v212_v35, %v211_v32 }
 0x13b   :  { %v214_v38 = vadd.f32 %v213_v36, %v197_v37 }
 0x13d   :  { %216 = vst.msk [vmem:[#allocation3] sm:$0x1] %vm54_vm2, %v214_v38 }
 0x144   :  { %v221_v46 = vld [vmem:[#allocation3] sm:$0x1] }
 0x19c   :  { %v147_v39 = vpop.xlane.xlu0 %146 }
 0x19d   :  { %v148_v40 = vsub.f32 %v135_v5, %v147_v39 }
 0x19f   :  { %v149_v41 = vmul.f32 1.442695, %v148_v40 }
 0x1a1   :  { %283 = vpow2.f32 %v149_v41 }
 0x1a2   :  { %285 = vlog2.f32 %v221_v46 }
 0x1ab   :  { %v284_v42 = vpop.eup %283 }
 0x1ac   :  { %v151_v43 = vsel %vm144_vm3, %v284_v42, 0.0  ;;  %v286_v48 = vpop.eup %285 }
 0x1ad   :  { %152 = vadd.xlane.f32.xlu0 %v151_v43  ;;  %v223_v51 = vmul.f32 0.6931472, %v286_v48 }
 0x1af   :  { %v225_v55 = vadd.f32 %v224_v53, %v223_v51 }
 0x1b1   :  { %170 = vadd.xlane.f32.xlu0 %v169_v45  ;;  %v226_v56 = vsel %vm54_vm2, %v225_v55, 0.0 }
 0x23a   :  { %v153_v47 = vpop.xlane.xlu0 %152 }
 0x23b   :  { %287 = vlog2.f32 %v153_v47 }
 0x23e   :  { %v171_v57 = vpop.xlane.xlu0 %170 }
 0x23f   :  { %v172_v58 = vrot.slane %v171_v57, 4 }
 0x241   :  { %v173_v59 = vadd.f32 %v172_v58, %v171_v57 }
 0x243   :  { %v174_v60 = vrot.slane %v173_v59, 2 }
 0x245   :  { %v288_v49 = vpop.eup %287  ;;  %v175_v1 = vadd.f32 %v174_v60, %v173_v59 }
 0x246   :  { %v155_v50 = vmul.f32 0.6931472, %v288_v49 }
 0x247   :  { %v176_v7 = vrot.slane %v175_v1, 1 }
 0x248   :  { %v156_v52 = vadd.f32 %v155_v50, %v147_v39 }
 0x249   :  { %v177_v12 = vadd.f32 %v176_v7, %v175_v1 }
 0x24a   :  { %v159_v54 = vsel %vm158_vm4, %v156_v52, 0.0 }
 0x24b   :  { %160 = vadd.xlane.f32.xlu1 %v159_v54 }
 0x24f   :  { %227 = vadd.xlane.f32.xlu1 %v226_v56 }
 0x2d8   :  { %v161_v61 = vpop.xlane.xlu1 %160 }
 0x2d9   :  { %v162_v62 = vrot.slane %v161_v61, 4 }
 0x2db   :  { %v163_v63 = vadd.f32 %v162_v62, %v161_v61 }
 0x2dc   :  { %v228_v2 = vpop.xlane.xlu1 %227 }
 0x2dd   :  { %v164_v3 = vrot.slane %v163_v63, 2  ;;  %v229_v4 = vrot.slane %v228_v2, 4 }
 0x2df   :  { %v230_v5 = vadd.f32 %v229_v4, %v228_v2  ;;  %v165_v6 = vadd.f32 %v164_v3, %v163_v63 }
 0x2e1   :  { %v231_v8 = vrot.slane %v230_v5, 2  ;;  %v166_v9 = vrot.slane %v165_v6, 1 }
 0x2e3   :  { %v232_v10 = vadd.f32 %v231_v8, %v230_v5  ;;  %v167_v11 = vadd.f32 %v166_v9, %v165_v6 }
 0x2e5   :  { %266 = vpush %v167_v11  ;;  %v233_v0 = vrot.slane %v232_v10, 1 }
 0x2e6   :  { %268 = vpush %v177_v12 }
 0x2e7   :  { %v234_v13 = vadd.f32 %v233_v0, %v232_v10 }
 0x2e9   :  { %270 = vpush %v234_v13 }
 0x316   :  { %s267_s2 = spop %266 }
 0x317   :  { %s269_s19 = spop %268 }
 0x318   :  { %s179_s20 = smul.f32 2.0, %s269_s19 }
 0x31a   :  { %s180_s21 = ssub.f32 %s267_s2, %s179_s20  ;;  %s271_s22 = spop %270 }
 0x31b   :  { %v237_v18 = vstv %s271_s22 }
 0x31c   :  { %v181_v15 = vstv %s180_s21 }
 0x31d   :  { %v182_v16 = vadd.f32 %v181_v15, %v157_v14 }
 0x31f   :  { %184 = vst.msk [vmem:[#allocation4] sm:$0x1] %vm57_vm5, %v182_v16 }
 0x326   :  { %v236_v17 = vld [vmem:[#allocation4] sm:$0x1] }
 0x327   :  { %v238_v19 = vadd.f32 %v237_v18, %v236_v17 }
 0x329   :  { %v239_v20 = vmul.f32 0.0625, %v238_v19 }
 0x32b   :  { %240 = vst.msk [vmem:[#allocation11] sm:$0x1] %vm57_vm5, %v239_v20 }
 0x32c   :  { %366 = shalt.err (!%p363_p0)
}
 0x32d   :  { %s367_s29 = scalar_lea.hbm %s479_s3, 16 }
 0x32e   :  { %p368_p1 = scmp.ne.s32.totalorder %s479_s3, %s367_s29  ;;  %p371_p2 = scmp.lt.u32.totalorder %s367_s29, %s479_s3 }
 0x330   :  { %p373_p3 = pnand %p371_p2, %p368_p1 }
 0x332   :  { %376 = shalt.err (!%p373_p3)
}
 0x333   :  { %250 = dma.vmem_to_hbm [thread:$0]  %s248_s24, 16, %s479_s3, [#allocation7]  }
 0x334   :  { %381 = dma.done.wait [#allocation7], 16  }
 0x335   :  { %382 = vsyncadd [#allocation7], 4294967280 }
 0x336   :  { %254 = vsyncpa [#allocation6], 1 }
 0x337   :  { %255 = vsyncpa [#allocation9], 1 }
 0x338   :  { %256 = vsyncpa [#allocation7], 1 }

</bundles_post_ra>
